<compile_context>
chip_gen: v7x
topology: tpu7x:2x2x1
jax: 0.10.0
libtpu: 0.0.40
codegen_flags: <defaults>
</compile_context>

<pallas_src>
import numpy as np
import jax
import jax.numpy as jnp
from jax.experimental import pallas as pl
from jax.experimental.pallas import tpu as pltpu


def _dma_copy_kernel(x_ref, o_ref, sem):
    # Both refs live in pl.ANY (HBM).  One contiguous whole-buffer DMA,
    # HBM -> HBM; nothing is staged through VMEM.
    cp = pltpu.make_async_copy(x_ref, o_ref, sem)
    cp.start()
    cp.wait()


def _resolve_shape(shape, n_in):
    """torch .view semantics, including a single -1 wildcard."""
    shape = tuple(int(s) for s in shape)
    if shape.count(-1) > 1:
        raise ValueError("only one dimension may be -1")
    if -1 in shape:
        known = 1
        for s in shape:
            if s != -1:
                known *= s
        if known == 0 or n_in % known != 0:
            raise ValueError(f"cannot infer -1 in {shape} for {n_in} elements")
        shape = tuple(n_in // known if s == -1 else s for s in shape)
    n_out = int(np.prod(shape)) if shape else 1
    if n_out != n_in:
        raise ValueError(f"cannot view {n_in} elements as {shape}")
    return shape


def reshape_forward(x, shape, *, materialize=True, donate=False):
    """Pallas equivalent of Reshape(shape).forward(x) = x.view(x.shape[0], *shape)."""
    B = x.shape[0]
    n_in = int(np.prod(x.shape[1:])) if x.ndim > 1 else 1
    shape = _resolve_shape(shape, n_in)

    if not materialize:
        # Highest-value path from the perf review: a contiguous row-major
        # reshape is a pure metadata op in XLA -- no kernel, no HBM traffic.
        return jnp.reshape(x, (B,) + shape)

    total = B * n_in
    itemsize = jnp.dtype(x.dtype).itemsize

    # Free row-major-preserving relabel; the buffer is contiguous, so the DMA
    # below is a single unit-stride transfer regardless of the 2-D shape used.
    x_flat = jnp.reshape(x, (B, n_in))

    out_flat = pl.pallas_call(
        _dma_copy_kernel,
        out_shape=jax.ShapeDtypeStruct((B, n_in), x.dtype),
        in_specs=[pl.BlockSpec(memory_space=pl.ANY)],
        out_specs=pl.BlockSpec(memory_space=pl.ANY),
        scratch_shapes=[pltpu.SemaphoreType.DMA(())],
        # Advisory: mem-bound identity copy (read + write of the buffer);
        # lets XLA overlap it with neighbouring compute.
        cost_estimate=pl.CostEstimate(
            flops=0, transcendentals=0, bytes_accessed=2 * total * itemsize),
        # With donate=True the output aliases the input buffer (in-place).
        input_output_aliases=({0: 0} if donate else {}),
    )(x_flat)

    # Free relabel to the requested output shape.
    return jnp.reshape(out_flat, (B,) + shape)


if __name__ == "__main__":
    # Small shapes consistent with the module: batch=2, channels=4, spatial=16.
    B, C, H, W = 2, 4, 16, 16
    target_shape = (16, 64)  # prod == C*H*W == 1024

    key = jax.random.PRNGKey(0)
    x = jax.random.normal(key, (B, C, H, W), dtype=jnp.float32)

    # Materialized path (exercises the Pallas HBM->HBM DMA kernel).
    out = reshape_forward(x, target_shape)
    out = jax.block_until_ready(out)

    # Pure-JAX reference of the exact PyTorch semantics (row-major view).
    ref = jnp.reshape(x, (B,) + target_shape)
    assert out.shape == (B,) + target_shape
    assert jnp.array_equal(out, ref), "mismatch vs reference"

    # -1 wildcard (torch .view semantics), still through the kernel.
    out2 = jax.block_until_ready(reshape_forward(x, (-1, 64)))
    assert out2.shape == (B, 16, 64)
    assert jnp.array_equal(out2, ref), "mismatch vs reference (-1 path)"

    # Zero-copy metadata path (top perf recommendation).
    out3 = jax.block_until_ready(reshape_forward(x, target_shape, materialize=False))
    assert jnp.array_equal(out3, ref), "mismatch vs reference (metadata path)"

    print("KERNEL_OK")
</pallas_src>

<mosaic_0001>
module attributes {stable_mosaic.version = 11 : i64} {
  func.func @_dma_copy_kernel(%arg0: memref<2x1024xf32, #tpu.memory_space<any>>, %arg1: memref<2x1024xf32, #tpu.memory_space<any>>, %arg2: memref<!tpu.dma_semaphore, #tpu.memory_space<semaphore_mem>>) attributes {dimension_semantics = [], scalar_prefetch = 0 : i64, scratch_operands = 1 : i64, tpu.core_type = #tpu.core_type<tc>} {
    tpu.enqueue_dma source(%arg0 : memref<2x1024xf32, #tpu.memory_space<any>>) target(%arg1 : memref<2x1024xf32, #tpu.memory_space<any>>) target_semaphore(%arg2 : memref<!tpu.dma_semaphore, #tpu.memory_space<semaphore_mem>>)
    tpu.wait_dma2 semaphore(%arg2 : memref<!tpu.dma_semaphore, #tpu.memory_space<semaphore_mem>>) src(%arg0 : memref<2x1024xf32, #tpu.memory_space<any>>) dst(%arg1 : memref<2x1024xf32, #tpu.memory_space<any>>)
    return
  }
}

</mosaic_0001>

<bundles_post_ra>
// kernel: tpu_custom_call.1
= control target key start
LH: loop header
LB: loop body
LE: loop exit
PB: predicated region body
PF: predicated region fallthrough
CT: control target
= control target key end

     0   :  { %s35_s6 = smov [#allocation2]   ;;  %s36_s7 = smov [#allocation3]   ;;  %s54_s0 = inlined_call_operand.hbm [shape: f32[2,1024], index: 0, kind: input, shape index: {}]   ;;  %s55_s1 = inlined_call_operand.hbm [shape: f32[2,1024], index: 1, kind: output, shape index: {}]  }
   0x1   :  { %s37_s8 = smov 0  }
   0x2   :  { %18 = dma.general %s54_s0, 256, %s55_s1, %s35_s6, %s36_s7, [#allocation4], %s37_s8, 0  }
   0x3   :  { %33 = dma.done.wait [#allocation2], 256 }
   0x4   :  { %34 = vsyncadd [#allocation2], 4294967040 }
   0x5   :  { %23 = vsyncmov [#allocation2] }
   0x8   :  { %s24_s13 = vpop.sfrf %23 }
   0x9   :  { %p29_p0 = scmp.ne.s32.totalorder %s24_s13, 0 }
   0xb   :  { %28 = shalt.err (%p29_p0)  }

</bundles_post_ra>
